<compile_context>
chip_gen: v6e
topology: v6e:2x2x1
jax: 0.10.0
libtpu: 0.0.40
codegen_flags: <defaults>
</compile_context>

<pallas_src>
import functools
import math

import jax
import jax.numpy as jnp
from jax.experimental import pallas as pl
from jax.experimental.pallas import tpu as pltpu


def _transition_kernel(x_ref, m_ref, w1_ref, b1_ref, w2_ref, b2_ref, o_ref,
                       *, eps, sub, packed):
    """Fused LN -> Linear1 -> ReLU -> Linear2 on one [tile, d] (packed) tile."""
    tile = x_ref.shape[0]
    num_sub = tile // sub  # sub divides tile by construction

    def process(r0):
        x = x_ref[pl.ds(r0, sub), :].astype(jnp.float32)

        if packed:
            m = m_ref[...]

            def seg_avg(v):
                # Segmented (per logical row) mean via the MXU: v @ M, where M
                # is block-diag((1/c) * ones(c, c)).  The default-precision MXU
                # pass may truncate f32 operands to bf16, so add an exact
                # residual pass (hi is bf16-exact, M entries are powers of two)
                # to keep the LayerNorm statistics at ~f32 accuracy.
                hi = v.astype(jnp.bfloat16).astype(jnp.float32)
                lo = v - hi
                return (jnp.dot(hi, m, preferred_element_type=jnp.float32)
                        + jnp.dot(lo, m, preferred_element_type=jnp.float32))

            mean = seg_avg(x)                       # [sub, d], per-segment bcast
            centered = x - mean
            var = seg_avg(centered * centered)      # [sub, d]
        else:
            mean = jnp.mean(x, axis=-1, keepdims=True)
            centered = x - mean
            var = jnp.mean(centered * centered, axis=-1, keepdims=True)

        xn = (centered * jax.lax.rsqrt(var + eps)).astype(w1_ref.dtype)

        # Linear1 (gamma/beta pre-folded) -> ReLU -> Linear2, f32 accumulation,
        # full contraction depth (no hidden chunking).
        h = jnp.dot(xn, w1_ref[...], preferred_element_type=jnp.float32)
        h = jnp.maximum(h + b1_ref[...], 0.0)
        y = jnp.dot(h.astype(w2_ref.dtype), w2_ref[...],
                    preferred_element_type=jnp.float32)
        o_ref[pl.ds(r0, sub), :] = (y + b2_ref[...]).astype(o_ref.dtype)

    if num_sub == 1:
        process(0)
    else:
        # fori_loop (not a static unroll) bounds live ranges at large DMA tiles.
        def body(s, carry):
            process(pl.multiple_of(s * sub, sub))
            return carry

        jax.lax.fori_loop(0, num_sub, body, 0)


def _pick_row_tile(rows_p):
    """DMA row tile (in packed rows)."""
    if rows_p <= 256:
        return rows_p                      # whole input in a single grid step
    for t in (1024, 512, 256):
        # >= 4 grid steps -> pipelining + >= 2 steps per TensorCore on v7x.
        if pl.cdiv(rows_p, t) >= 4:
            return t
    return 256


def _vmem_limit_bytes(est_bytes):
    """Generation-aware VMEM budget with headroom for compiler scratch."""
    try:
        cap = int(pltpu.get_tpu_info().vmem_capacity_bytes)
    except Exception:      # noqa: BLE001 - conservative fallback (v7x-sized)
        cap = 64 << 20
    return int(min(max(2 * est_bytes, 32 << 20), (cap * 3) // 4))


def transition(x, gamma, beta, w1, b1, w2, b2, *, eps=1e-5):
    """Pallas Transition forward.

    Args:
      x:      [..., c] single or pair features ([N, L, c] or [N, L, L, c])
      gamma:  [c]        layernorm weight
      beta:   [c]        layernorm bias
      w1:     [c, n*c]   linear_1 weight (in x out layout)
      b1:     [n*c]      linear_1 bias
      w2:     [n*c, c]   linear_2 weight
      b2:     [c]        linear_2 bias
    """
    orig_shape = x.shape
    c = orig_shape[-1]
    hidden = w1.shape[1]
    assert w1.shape == (c, hidden) and w2.shape == (hidden, c)
    rows = math.prod(orig_shape[:-1])

    # Lane-packing factor: P logical rows per 128-lane group when c < 128.
    if c < 128 and 128 % c == 0 and rows % (128 // c) == 0:
        P = 128 // c
    else:
        P = 1
    d = P * c                 # lane width of the packed view
    H = P * hidden            # packed hidden width
    rows_p = rows // P

    x2 = x.reshape(rows_p, d)                        # free, row-major reshape

    # Fold LayerNorm's affine params into linear_1 (exact up to f32 rounding).
    w1f = gamma.astype(w1.dtype)[:, None] * w1
    b1f = (beta.astype(jnp.float32) @ w1.astype(jnp.float32)
           + b1.astype(jnp.float32))

    # Block-diagonal expansions keep packed rows independent through the MLP.
    m_mat = jnp.kron(jnp.eye(P, dtype=jnp.float32),
                     jnp.full((c, c), 1.0 / c, dtype=jnp.float32))     # [d, d]
    w1bd = jnp.kron(jnp.eye(P, dtype=w1.dtype), w1f)                   # [d, H]
    w2bd = jnp.kron(jnp.eye(P, dtype=w2.dtype), w2)                    # [H, d]
    b1t = jnp.tile(b1f, P).reshape(1, H).astype(jnp.float32)
    b2t = jnp.tile(b2.astype(jnp.float32), P).reshape(1, d)

    tile = _pick_row_tile(rows_p)
    sub = tile if tile <= 256 else 256               # in-kernel row sub-tile
    grid = (pl.cdiv(rows_p, tile),)                  # partial last block is OK

    xb = int(jnp.dtype(x.dtype).itemsize)
    wb = int(jnp.dtype(w1.dtype).itemsize)

    cost = pl.CostEstimate(
        flops=int(4 * rows_p * d * H + 8 * rows_p * d * d),
        transcendentals=int(rows_p * d),
        bytes_accessed=int(2 * rows_p * d * xb + d * d * 4
                           + 2 * d * H * wb + (H + d) * 4),
    )

    # VMEM: double-buffered x/out tiles + (double-buffered) resident params
    # + per-sub-block f32 intermediates.
    est = (4 * tile * d * xb
           + 2 * (d * d * 4 + 2 * d * H * wb + (H + d) * 4)
           + sub * (4 * d + 2 * H) * 4)

    out = pl.pallas_call(
        functools.partial(_transition_kernel, eps=eps, sub=sub, packed=(P > 1)),
        out_shape=jax.ShapeDtypeStruct((rows_p, d), x.dtype),
        grid=grid,
        in_specs=[
            pl.BlockSpec((tile, d), lambda i: (i, 0)),   # x rows (packed view)
            pl.BlockSpec((d, d), lambda i: (0, 0)),      # LN averaging matrix
            pl.BlockSpec((d, H), lambda i: (0, 0)),      # w1 block-diag (resident)
            pl.BlockSpec((1, H), lambda i: (0, 0)),      # b1 (folded, tiled)
            pl.BlockSpec((H, d), lambda i: (0, 0)),      # w2 block-diag (resident)
            pl.BlockSpec((1, d), lambda i: (0, 0)),      # b2 (tiled)
        ],
        out_specs=pl.BlockSpec((tile, d), lambda i: (i, 0)),
        compiler_params=pltpu.CompilerParams(
            dimension_semantics=("parallel",),
            vmem_limit_bytes=_vmem_limit_bytes(est)),
        cost_estimate=cost,
    )(x2, m_mat, w1bd, b1t, w2bd, b2t)

    return out.reshape(orig_shape)


def reference_transition(x, gamma, beta, w1, b1, w2, b2, eps=1e-5):
    """Pure-JAX reference for correctness checking."""
    xf = x.astype(jnp.float32)
    mean = jnp.mean(xf, axis=-1, keepdims=True)
    var = jnp.mean((xf - mean) ** 2, axis=-1, keepdims=True)
    xn = (xf - mean) * jax.lax.rsqrt(var + eps) * gamma + beta
    h = jnp.maximum(xn @ w1 + b1, 0.0)
    return (h @ w2 + b2).astype(x.dtype)


if __name__ == "__main__":
    key = jax.random.PRNGKey(0)
    kx1, kx2, kx3, kx4, kw1, kb1, kw2, kb2 = jax.random.split(key, 8)

    # Module config: c = 32, n = 4 (hidden = 128).
    c, n = 32, 4
    hidden = n * c

    gamma = jnp.ones((c,), jnp.float32)
    beta = jnp.zeros((c,), jnp.float32)
    w1 = jax.random.normal(kw1, (c, hidden), jnp.float32) * 0.05
    b1 = jax.random.normal(kb1, (hidden,), jnp.float32) * 0.01
    w2 = jax.random.normal(kw2, (hidden, c), jnp.float32) * 0.05
    b2 = jax.random.normal(kb2, (c,), jnp.float32) * 0.01
    params_f32 = (gamma, beta, w1, b1, w2, b2)

    def run_and_check(x, params, atol, rtol, name):
        out = jax.block_until_ready(transition(x, *params))
        ref = reference_transition(x, *params)
        assert out.shape == x.shape, (name, out.shape, x.shape)
        diff = jnp.abs(out.astype(jnp.float32) - ref.astype(jnp.float32))
        ok = bool(jnp.allclose(out.astype(jnp.float32),
                               ref.astype(jnp.float32), atol=atol, rtol=rtol))
        assert ok, (name, float(jnp.max(diff)))

    # Both kernel and reference run the MXU's default-precision f32 matmul
    # path, so agreement tighter than ~1e-3 is not guaranteed; real bugs
    # (wrong packing / LN / bias) show up at O(1e-1).
    # 1) pair features [N, L, L, c]: packed path, single grid step.
    run_and_check(jax.random.normal(kx1, (2, 8, 8, c), jnp.float32),
                  params_f32, 1e-3, 1e-3, "pair_small")
    # 2) single features [N, L, c], packed rows not a multiple of 8
    #    (full-extent row tile).
    run_and_check(jax.random.normal(kx2, (2, 50, c), jnp.float32),
                  params_f32, 1e-3, 1e-3, "single_odd")
    # 3) larger pair features: multi-step grid + in-kernel row sub-tiling
    #    (lax.fori_loop path) + partial-free tiling.
    run_and_check(jax.random.normal(kx3, (2, 64, 64, c), jnp.float32),
                  params_f32, 1e-3, 1e-3, "pair_large")
    # 4) rows not divisible by the packing factor -> generic unpacked path.
    run_and_check(jax.random.normal(kx4, (2, 7, c), jnp.float32),
                  params_f32, 1e-3, 1e-3, "unpacked_fallback")
    # 5) bf16 parameters (native bf16 MXU path), looser tolerance.
    params_bf16 = (gamma, beta,
                   w1.astype(jnp.bfloat16), b1.astype(jnp.bfloat16),
                   w2.astype(jnp.bfloat16), b2.astype(jnp.bfloat16))
    run_and_check(jax.random.normal(kx1, (2, 8, 8, c), jnp.float32),
                  params_bf16, 2e-2, 2e-2, "pair_bf16_params")

    print("KERNEL_OK")
</pallas_src>

<mosaic_0001>
module attributes {stable_mosaic.version = 11 : i64} {
  func.func @_transition_kernel(%arg0: i32, %arg1: memref<32x128xf32, #tpu.memory_space<vmem>>, %arg2: memref<128x128xf32, #tpu.memory_space<vmem>>, %arg3: memref<128x512xf32, #tpu.memory_space<vmem>>, %arg4: memref<1x512xf32, #tpu.memory_space<vmem>>, %arg5: memref<512x128xf32, #tpu.memory_space<vmem>>, %arg6: memref<1x128xf32, #tpu.memory_space<vmem>>, %arg7: memref<32x128xf32, #tpu.memory_space<vmem>>) attributes {dimension_semantics = [#tpu.dimension_semantics<parallel>], iteration_bounds = array<i64: 1>, scalar_prefetch = 0 : i64, scratch_operands = 0 : i64, tpu.core_type = #tpu.core_type<tc>, window_params = [{transform_indices = @transform_0, window_bounds = array<i64: 32, 128>}, {pipeline_mode = #tpu.pipeline_mode<synchronous>, transform_indices = @transform_1, window_bounds = array<i64: 128, 128>}, {pipeline_mode = #tpu.pipeline_mode<synchronous>, transform_indices = @transform_2, window_bounds = array<i64: 128, 512>}, {pipeline_mode = #tpu.pipeline_mode<synchronous>, transform_indices = @transform_3, window_bounds = array<i64: 1, 512>}, {pipeline_mode = #tpu.pipeline_mode<synchronous>, transform_indices = @transform_4, window_bounds = array<i64: 512, 128>}, {pipeline_mode = #tpu.pipeline_mode<synchronous>, transform_indices = @transform_5, window_bounds = array<i64: 1, 128>}, {transform_indices = @transform_6, window_bounds = array<i64: 32, 128>}]} {
    %c0 = arith.constant 0 : index
    %c0_0 = arith.constant 0 : index
    %0 = vector.load %arg1[%c0, %c0_0] : memref<32x128xf32, #tpu.memory_space<vmem>>, vector<32x128xf32>
    %c0_1 = arith.constant 0 : index
    %c0_2 = arith.constant 0 : index
    %1 = vector.load %arg2[%c0_1, %c0_2] : memref<128x128xf32, #tpu.memory_space<vmem>>, vector<128x128xf32>
    %2 = arith.truncf %0 : vector<32x128xf32> to vector<32x128xbf16>
    %3 = arith.extf %2 : vector<32x128xbf16> to vector<32x128xf32>
    %4 = arith.subf %0, %3 : vector<32x128xf32>
    %cst = arith.constant dense<0.000000e+00> : vector<32x128xf32>
    %5 = tpu.matmul %3, %1, %cst {dimension_numbers = #tpu.dot_dimension_numbers<[1], [0], [0], [1], [0, 0, 1, 1], [], []>} : vector<32x128xf32>, vector<128x128xf32>, vector<32x128xf32> -> vector<32x128xf32>
    %cst_3 = arith.constant dense<0.000000e+00> : vector<32x128xf32>
    %6 = tpu.matmul %4, %1, %cst_3 {dimension_numbers = #tpu.dot_dimension_numbers<[1], [0], [0], [1], [0, 0, 1, 1], [], []>} : vector<32x128xf32>, vector<128x128xf32>, vector<32x128xf32> -> vector<32x128xf32>
    %7 = arith.addf %5, %6 : vector<32x128xf32>
    %8 = arith.subf %0, %7 : vector<32x128xf32>
    %9 = arith.mulf %8, %8 : vector<32x128xf32>
    %10 = arith.truncf %9 : vector<32x128xf32> to vector<32x128xbf16>
    %11 = arith.extf %10 : vector<32x128xbf16> to vector<32x128xf32>
    %12 = arith.subf %9, %11 : vector<32x128xf32>
    %cst_4 = arith.constant dense<0.000000e+00> : vector<32x128xf32>
    %13 = tpu.matmul %11, %1, %cst_4 {dimension_numbers = #tpu.dot_dimension_numbers<[1], [0], [0], [1], [0, 0, 1, 1], [], []>} : vector<32x128xf32>, vector<128x128xf32>, vector<32x128xf32> -> vector<32x128xf32>
    %cst_5 = arith.constant dense<0.000000e+00> : vector<32x128xf32>
    %14 = tpu.matmul %12, %1, %cst_5 {dimension_numbers = #tpu.dot_dimension_numbers<[1], [0], [0], [1], [0, 0, 1, 1], [], []>} : vector<32x128xf32>, vector<128x128xf32>, vector<32x128xf32> -> vector<32x128xf32>
    %15 = arith.addf %13, %14 : vector<32x128xf32>
    %cst_6 = arith.constant 9.99999974E-6 : f32
    %16 = vector.broadcast %cst_6 : f32 to vector<32x128xf32>
    %17 = arith.addf %15, %16 : vector<32x128xf32>
    %18 = math.rsqrt %17 : vector<32x128xf32>
    %19 = arith.mulf %8, %18 : vector<32x128xf32>
    %c0_7 = arith.constant 0 : index
    %c0_8 = arith.constant 0 : index
    %20 = vector.load %arg3[%c0_7, %c0_8] : memref<128x512xf32, #tpu.memory_space<vmem>>, vector<128x512xf32>
    %cst_9 = arith.constant dense<0.000000e+00> : vector<32x512xf32>
    %21 = tpu.matmul %19, %20, %cst_9 {dimension_numbers = #tpu.dot_dimension_numbers<[1], [0], [0], [1], [0, 0, 1, 1], [], []>} : vector<32x128xf32>, vector<128x512xf32>, vector<32x512xf32> -> vector<32x512xf32>
    %c0_10 = arith.constant 0 : index
    %c0_11 = arith.constant 0 : index
    %22 = vector.load %arg4[%c0_10, %c0_11] : memref<1x512xf32, #tpu.memory_space<vmem>>, vector<1x512xf32>
    %23 = vector.broadcast %22 : vector<1x512xf32> to vector<32x512xf32>
    %24 = arith.addf %21, %23 : vector<32x512xf32>
    %cst_12 = arith.constant 0.000000e+00 : f32
    %25 = vector.broadcast %cst_12 : f32 to vector<32x512xf32>
    %26 = arith.maximumf %24, %25 : vector<32x512xf32>
    %c0_13 = arith.constant 0 : index
    %c0_14 = arith.constant 0 : index
    %27 = vector.load %arg5[%c0_13, %c0_14] : memref<512x128xf32, #tpu.memory_space<vmem>>, vector<512x128xf32>
    %cst_15 = arith.constant dense<0.000000e+00> : vector<32x128xf32>
    %28 = tpu.matmul %26, %27, %cst_15 {dimension_numbers = #tpu.dot_dimension_numbers<[1], [0], [0], [1], [0, 0, 1, 1], [], []>} : vector<32x512xf32>, vector<512x128xf32>, vector<32x128xf32> -> vector<32x128xf32>
    %c0_16 = arith.constant 0 : index
    %c0_17 = arith.constant 0 : index
    %29 = vector.load %arg6[%c0_16, %c0_17] : memref<1x128xf32, #tpu.memory_space<vmem>>, vector<1x128xf32>
    %30 = vector.broadcast %29 : vector<1x128xf32> to vector<32x128xf32>
    %31 = arith.addf %28, %30 : vector<32x128xf32>
    %c0_18 = arith.constant 0 : index
    %c0_19 = arith.constant 0 : index
    %32 = vector.load %arg7[%c0_18, %c0_19] : memref<32x128xf32, #tpu.memory_space<vmem>>, vector<32x128xf32>
    tpu.vector_store %arg7[%c0_18, %c0_19], %31 {strides = array<i32>} : memref<32x128xf32, #tpu.memory_space<vmem>>, vector<32x128xf32>,
    return
  }
  func.func @transform_0(%arg0: i32) -> (i32, i32) {
    %c0_i32 = arith.constant 0 : i32
    %c0_i32_0 = arith.constant 0 : i32
    return %arg0, %c0_i32 : i32, i32
  }
  func.func @transform_1(%arg0: i32) -> (i32, i32) {
    %c0_i32 = arith.constant 0 : i32
    %c0_i32_0 = arith.constant 0 : i32
    %c0_i32_1 = arith.constant 0 : i32
    return %c0_i32, %c0_i32_0 : i32, i32
  }
  func.func @transform_2(%arg0: i32) -> (i32, i32) {
    %c0_i32 = arith.constant 0 : i32
    %c0_i32_0 = arith.constant 0 : i32
    %c0_i32_1 = arith.constant 0 : i32
    return %c0_i32, %c0_i32_0 : i32, i32
  }
  func.func @transform_3(%arg0: i32) -> (i32, i32) {
    %c0_i32 = arith.constant 0 : i32
    %c0_i32_0 = arith.constant 0 : i32
    %c0_i32_1 = arith.constant 0 : i32
    return %c0_i32, %c0_i32_0 : i32, i32
  }
  func.func @transform_4(%arg0: i32) -> (i32, i32) {
    %c0_i32 = arith.constant 0 : i32
    %c0_i32_0 = arith.constant 0 : i32
    %c0_i32_1 = arith.constant 0 : i32
    return %c0_i32, %c0_i32_0 : i32, i32
  }
  func.func @transform_5(%arg0: i32) -> (i32, i32) {
    %c0_i32 = arith.constant 0 : i32
    %c0_i32_0 = arith.constant 0 : i32
    %c0_i32_1 = arith.constant 0 : i32
    return %c0_i32, %c0_i32_0 : i32, i32
  }
  func.func @transform_6(%arg0: i32) -> (i32, i32) {
    %c0_i32 = arith.constant 0 : i32
    %c0_i32_0 = arith.constant 0 : i32
    return %arg0, %c0_i32 : i32, i32
  }
}

</mosaic_0001>

<bundles_post_ra>
// kernel: tpu_custom_call.1
= control target key start
LH: loop header
LB: loop body
LE: loop exit
PB: predicated region body
PF: predicated region fallthrough
CT: control target
= control target key end

     0   :  { %11 = vsyncpa [#allocation3], 0  ;;  %s1756_s0 = inlined_call_operand.hbm [shape: f32[32,128], index: 0, kind: input, shape index: {}]   ;;  %s1757_s1 = inlined_call_operand.hbm [shape: f32[128,128], index: 1, kind: input, shape index: {}]   ;;  %s1758_s2 = inlined_call_operand.hbm [shape: f32[128,512], index: 2, kind: input, shape index: {}]   ;;  %s1759_s3 = inlined_call_operand.vmem [shape: f32[1,512], index: 3, kind: input, shape index: {}]   ;;  %s1760_s4 = inlined_call_operand.hbm [shape: f32[512,128], index: 4, kind: input, shape index: {}]   ;;  %s1761_s5 = inlined_call_operand.vmem [shape: f32[1,128], index: 5, kind: input, shape index: {}]   ;;  %s1762_s6 = inlined_call_operand.hbm [shape: f32[32,128], index: 6, kind: output, shape index: {}]  }
   0x1   :  { %12 = vsyncpa [#allocation6], 0 }
   0x2   :  { %13 = vsyncpa [#allocation9], 0 }
   0x3   :  { %14 = vsyncpa [#allocation4], 0  ;;  %s1470_s21 = smov [#allocation5]   ;;  %s1471_s23 = smov [#allocation2]  }
   0x4   :  { %s32_s22 = sshll.u32 %s1470_s21, 4  ;;  %s20_s24 = sshll.u32 %s1471_s23, 4  ;;  %s33_s22 = int_to_ptr.vmem [resolvable:$true] %s32_s22  ;;  %s21_s24 = int_to_ptr.vmem [resolvable:$true] %s20_s24 }
   0x5   :  { %s1370_s25 = scalar_lea.vmem %s33_s22, 2048  ;;  %p1375_p1 = scmp.lt.s32.totalorder %s33_s22, %s33_s22 }
   0x6   :  { %p1371_p0 = scmp.ne.s32.totalorder %s33_s22, %s1370_s25  ;;  %p1376_p2 = scmp.lt.s32.totalorder %s1370_s25, %s1370_s25 }
   0x8   :  { %p1377_p3 = por %p1376_p2, %p1375_p1 }
   0xa   :  { %p1378_p4 = pnand %p1377_p3, %p1371_p0 }
   0xc   :  { %1381 = shalt.err (!%p1378_p4)
}
   0xd   :  { %s1472_s26 = smov 128   ;;  %s1473_s27 = smov 8  }
   0xe   :  { %38 = dma.hbm_to_vmem [thread:$0]  %s1757_s1, 2048, %s33_s22, [#allocation6], %s1472_s26, %s1472_s26, %s1473_s27  }
   0xf   :  { %s1390_s30 = scalar_lea.vmem %s21_s24, 512  ;;  %p1395_p6 = scmp.lt.s32.totalorder %s21_s24, %s21_s24 }
  0x10   :  { %p1391_p5 = scmp.ne.s32.totalorder %s21_s24, %s1390_s30  ;;  %p1396_p7 = scmp.lt.s32.totalorder %s1390_s30, %s1390_s30 }
  0x12   :  { %p1397_p8 = por %p1396_p7, %p1395_p6 }
  0x14   :  { %p1398_p9 = pnand %p1397_p8, %p1391_p5 }
  0x16   :  { %1401 = shalt.err (!%p1398_p9)
}
  0x17   :  { %26 = dma.hbm_to_vmem [thread:$0]  %s1756_s0, 512, %s21_s24, [#allocation3], %s1472_s26, %s1472_s26, %s1473_s27  }
  0x18   :  { %s1474_s9 = smov [#allocation7]  }
  0x19   :  { %s44_s10 = sshll.u32 %s1474_s9, 4  ;;  %s45_s10 = int_to_ptr.vmem [resolvable:$true] %s44_s10 }
  0x1a   :  { %s1410_s11 = scalar_lea.vmem %s45_s10, 8192  ;;  %p1415_p11 = scmp.lt.s32.totalorder %s45_s10, %s45_s10 }
  0x1b   :  { %p1411_p10 = scmp.ne.s32.totalorder %s45_s10, %s1410_s11  ;;  %p1416_p12 = scmp.lt.s32.totalorder %s1410_s11, %s1410_s11 }
  0x1d   :  { %p1417_p13 = por %p1416_p12, %p1415_p11 }
  0x1f   :  { %p1418_p0 = pnand %p1417_p13, %p1411_p10 }
  0x21   :  { %1421 = shalt.err (!%p1418_p0)
}
  0x22   :  { %s1475_s1 = smov 512   ;;  %s1476_s12 = smov 32  }
  0x23   :  { %50 = dma.hbm_to_vmem [thread:$0]  %s1758_s2, 8192, %s45_s10, [#allocation6], %s1475_s1, %s1475_s1, %s1476_s12  }
  0x24   :  { %s1477_s15 = smov [#allocation8]  }
  0x25   :  { %s58_s16 = sshll.u32 %s1477_s15, 4  ;;  %s59_s16 = int_to_ptr.vmem [resolvable:$true] %s58_s16 }
  0x26   :  { %s1430_s0 = scalar_lea.vmem %s59_s16, 8192  ;;  %p1435_p2 = scmp.lt.s32.totalorder %s59_s16, %s59_s16 }
  0x27   :  { %p1431_p1 = scmp.ne.s32.totalorder %s59_s16, %s1430_s0  ;;  %p1436_p3 = scmp.lt.s32.totalorder %s1430_s0, %s1430_s0 }
  0x29   :  { %p1437_p4 = por %p1436_p3, %p1435_p2 }
  0x2b   :  { %p1438_p5 = pnand %p1437_p4, %p1431_p1 }
  0x2d   :  { %1441 = shalt.err (!%p1438_p5)
}
  0x2e   :  { %64 = dma.hbm_to_vmem [thread:$0]  %s1760_s4, 8192, %s59_s16, [#allocation9], %s1472_s26, %s1472_s26, %s1473_s27  }
  0x2f   :  { %1462 = dma.done.wait [#allocation3], 512  }
  0x30   :  { %1463 = vsyncadd [#allocation3], 4294966784 }
  0x31   :  { %1464 = dma.done.wait [#allocation6], 10240  }
  0x32   :  { %1465 = vsyncadd [#allocation6], 4294957056 }
  0x33   :  { %1466 = dma.done.wait [#allocation9], 8192  }
  0x34   :  { %1467 = vsyncadd [#allocation9], 4294959104  ;;  %v1536_v0 = vld [vmem:[#allocation5 + $0x78] sm:$0xff]  ;;  %v1538_v1 = vld [vmem:[#allocation5 + $0x70] sm:$0xff] }
  0x35   :  { %1192 = vmatprep.subr.mxu0 %v1536_v0  ;;  %1230 = vmatprep.subr.mxu1 %v1536_v0  ;;  %v1544_v2 = vld [vmem:[#allocation5 + $0x68] sm:$0xff]  ;;  %v1550_v3 = vld [vmem:[#allocation5 + $0x60] sm:$0xff]  ;;  %v1556_v4 = vld [vmem:[#allocation5 + $0x58] sm:$0xff] }
  0x36   :  { %1193 = vmatpush3.msra.mxu0 %v1536_v0  ;;  %1231 = vmatpush3.msra.mxu1 %v1536_v0  ;;  %v1562_v5 = vld [vmem:[#allocation5 + $0x50] sm:$0xff]  ;;  %v1568_v6 = vld [vmem:[#allocation5 + $0x48] sm:$0xff]  ;;  %v1574_v7 = vld [vmem:[#allocation5 + $0x40] sm:$0xff] }
  0x37   :  { %1194 = vmatprep.subr.mxu0 %v1538_v1  ;;  %1232 = vmatprep.subr.mxu1 %v1538_v1  ;;  %v1580_v8 = vld [vmem:[#allocation5 + $0x38] sm:$0xff]  ;;  %v1586_v9 = vld [vmem:[#allocation5 + $0x30] sm:$0xff]  ;;  %v1590_v10 = vld [vmem:[#allocation2] sm:$0xff] }
  0x38   :  { %1195 = vmatpush3.msra.mxu0 %v1538_v1  ;;  %1233 = vmatpush3.msra.mxu1 %v1538_v1  ;;  %v1592_v11 = vld [vmem:[#allocation2 + $0x8] sm:$0xff]  ;;  %v1602_v13 = vld [vmem:[#allocation5 + $0x20] sm:$0xff]  ;;  %v1606_v15 = vld [vmem:[#allocation2 + $0x10] sm:$0xff] }
  0x39   :  { %1196 = vmatprep.subr.mxu0 %v1544_v2  ;;  %1234 = vmatprep.subr.mxu1 %v1544_v2  ;;  %v1596_v12 = vld [vmem:[#allocation5 + $0x28] sm:$0xff]  ;;  %v99_v14 = vpack.c.bf16 %v1592_v11, %v1590_v10  ;;  %v1608_v16 = vld [vmem:[#allocation2 + $0x18] sm:$0xff]  ;;  %v1622_v19 = vld [vmem:[#allocation5 + $0x10] sm:$0xff] }
  0x3a   :  { %1197 = vmatpush3.msra.mxu0 %v1544_v2  ;;  %1235 = vmatpush3.msra.mxu1 %v1544_v2  ;;  %v1614_v17 = vld [vmem:[#allocation5 + $0x18] sm:$0xff]  ;;  %v100_v18 = vpack.c.bf16 %v1608_v16, %v1606_v15  ;;  %v1628_v21 = vld [vmem:[#allocation5 + $0x8] sm:$0xff]  ;;  %v1634_v24 = vld [vmem:[#allocation5] sm:$0xff] }
  0x3b   :  { %1198 = vmatprep.subr.mxu0 %v1550_v3  ;;  %1236 = vmatprep.subr.mxu1 %v1550_v3  ;;  %v101_v20 = vunpack.c.l.bf16 %v99_v14  ;;  %v102_v22 = vunpack.c.h.bf16 %v99_v14  ;;  %v540_v30 = vld [vmem:[#allocation7 + $0x1e8] sm:$0xff]  ;;  %v542_v31 = vld [vmem:[#allocation7 + $0x1f8] sm:$0xff]  ;;  %v541_v55 = vld [vmem:[#allocation7 + $0x1f0] sm:$0xff] }
  0x3c   :  { %1199 = vmatpush3.msra.mxu0 %v1550_v3  ;;  %1237 = vmatpush3.msra.mxu1 %v1550_v3  ;;  %v103_v23 = vunpack.c.l.bf16 %v100_v18  ;;  %v104_v27 = vunpack.c.h.bf16 %v100_v18  ;;  %v538_v59 = vld [vmem:[#allocation7 + $0x1d8] sm:$0xff]  ;;  %v539_v60 = vld [vmem:[#allocation7 + $0x1e0] sm:$0xff]  ;;  %v536_v63 = vld [vmem:[#allocation7 + $0x1c8] sm:$0xff] }
  0x3d   :  { %1200 = vmatprep.subr.mxu0 %v1556_v4  ;;  %1238 = vmatprep.subr.mxu1 %v1556_v4  ;;  %v105_v25 = vsub.f32 %v1590_v10, %v101_v20  ;;  %v106_v26 = vsub.f32 %v1592_v11, %v102_v22  ;;  %v523_v14 = vld [vmem:[#allocation7 + $0x160] sm:$0xff] }
  0x3e   :  { %1201 = vmatpush3.msra.mxu0 %v1556_v4  ;;  %1239 = vmatpush3.msra.mxu1 %v1556_v4  ;;  %v107_v28 = vsub.f32 %v1606_v15, %v103_v23  ;;  %v108_v29 = vsub.f32 %v1608_v16, %v104_v27  ;;  %v519_v18 = vld [vmem:[#allocation7 + $0x140] sm:$0xff] }
  0x3f   :  { %1202 = vmatprep.subr.mxu0 %v1562_v5  ;;  %1240 = vmatprep.subr.mxu1 %v1562_v5 }
  0x40   :  { %1203 = vmatpush3.msra.mxu0 %v1562_v5  ;;  %1241 = vmatpush3.msra.mxu1 %v1562_v5 }
  0x41   :  { %1204 = vmatprep.subr.mxu0 %v1568_v6  ;;  %1242 = vmatprep.subr.mxu1 %v1568_v6 }
  0x42   :  { %1205 = vmatpush3.msra.mxu0 %v1568_v6  ;;  %1243 = vmatpush3.msra.mxu1 %v1568_v6 }
  0x43   :  { %1206 = vmatprep.subr.mxu0 %v1574_v7  ;;  %1244 = vmatprep.subr.mxu1 %v1574_v7 }
  0x44   :  { %1207 = vmatpush3.msra.mxu0 %v1574_v7  ;;  %1245 = vmatpush3.msra.mxu1 %v1574_v7 }
  0x45   :  { %1208 = vmatprep.subr.mxu0 %v1580_v8  ;;  %1246 = vmatprep.subr.mxu1 %v1580_v8 }
  0x46   :  { %1209 = vmatpush3.msra.mxu0 %v1580_v8  ;;  %1247 = vmatpush3.msra.mxu1 %v1580_v8 }
  0x47   :  { %1210 = vmatprep.subr.mxu0 %v1586_v9  ;;  %1248 = vmatprep.subr.mxu1 %v1586_v9 }
  0x48   :  { %1211 = vmatpush3.msra.mxu0 %v1586_v9  ;;  %1249 = vmatpush3.msra.mxu1 %v1586_v9 }
  0x49   :  { %1212 = vmatprep.subr.mxu0 %v1596_v12  ;;  %1250 = vmatprep.subr.mxu1 %v1596_v12 }
  0x4a   :  { %1213 = vmatpush3.msra.mxu0 %v1596_v12  ;;  %1251 = vmatpush3.msra.mxu1 %v1596_v12 }
  0x4b   :  { %1214 = vmatprep.subr.mxu0 %v1602_v13  ;;  %1252 = vmatprep.subr.mxu1 %v1602_v13 }
  0x4c   :  { %1215 = vmatpush3.msra.mxu0 %v1602_v13  ;;  %1253 = vmatpush3.msra.mxu1 %v1602_v13 }
  0x4d   :  { %1216 = vmatprep.subr.mxu0 %v1614_v17  ;;  %1254 = vmatprep.subr.mxu1 %v1614_v17 }
  0x4e   :  { %1217 = vmatpush3.msra.mxu0 %v1614_v17  ;;  %1255 = vmatpush3.msra.mxu1 %v1614_v17 }
  0x4f   :  { %1218 = vmatprep.subr.mxu0 %v1622_v19  ;;  %1256 = vmatprep.subr.mxu1 %v1622_v19 }
  0x50   :  { %1219 = vmatpush3.msra.mxu0 %v1622_v19  ;;  %1257 = vmatpush3.msra.mxu1 %v1622_v19 }
  0x51   :  { %1220 = vmatprep.subr.mxu0 %v1628_v21  ;;  %1258 = vmatprep.subr.mxu1 %v1628_v21 }
  0x52   :  { %1221 = vmatpush3.msra.mxu0 %v1628_v21  ;;  %1259 = vmatpush3.msra.mxu1 %v1628_v21 }
  0x53   :  { %1222 = vmatprep.subr.mxu0 %v1634_v24  ;;  %1260 = vmatprep.subr.mxu1 %v1634_v24 }
  0x54   :  { %1223 = vmatpush3.msra.mxu0 %v1634_v24  ;;  %1224 = vmatprep.mubr.f32.mxu0 %v105_v25  ;;  %v514_v25 = vld [vmem:[#allocation7 + $0x118] sm:$0xff] }
  0x55   :  { %1261 = vmatpush3.msra.mxu1 %v1634_v24  ;;  %1262 = vmatprep.mubr.f32.mxu1 %v101_v20  ;;  %v516_v20 = vld [vmem:[#allocation7 + $0x128] sm:$0xff] }
  0x56   :  { %1225 = vmatmul.mubr.f32.vlgmr.msra.gmra.mxu0 %v106_v26  ;;  %1263 = vmatmul.mubr.f32.vlgmr.msra.gmra.mxu1 %v102_v22  ;;  %v515_v22 = vld [vmem:[#allocation7 + $0x120] sm:$0xff] }
  0x57   :  { %1227 = vmatprep.mubr.f32.mxu0 %v107_v28  ;;  %1265 = vmatprep.mubr.f32.mxu1 %v103_v23  ;;  %v517_v23 = vld [vmem:[#allocation7 + $0x130] sm:$0xff]  ;;  %v511_v26 = vld [vmem:[#allocation7 + $0x100] sm:$0xff]  ;;  %v508_v28 = vld [vmem:[#allocation7 + $0xe8] sm:$0xff] }
  0x58   :  { %1306 = vmatprep.subr.mxu1 %v1536_v0  ;;  %1268 = vmatprep.subr.mxu0 %v1536_v0 }
  0x59   :  { %1307 = vmatpush3.msra.mxu1 %v1536_v0  ;;  %1269 = vmatpush3.msra.mxu0 %v1536_v0  ;;  %v535_v0 = vld [vmem:[#allocation7 + $0x1c0] sm:$0xff] }
  0x5a   :  { %1228 = vmatmul.mubr.f32.gmra.mxu0 %v108_v29  ;;  %1266 = vmatmul.mubr.f32.gmra.mxu1 %v104_v27  ;;  %v513_v27 = vld [vmem:[#allocation7 + $0x110] sm:$0xff]  ;;  %v510_v29 = vld [vmem:[#allocation7 + $0xf8] sm:$0xff] }
  0x5b   :  { %1308 = vmatprep.subr.mxu1 %v1538_v1  ;;  %1270 = vmatprep.subr.mxu0 %v1538_v1 }
  0x5c   :  { %1309 = vmatpush3.msra.mxu1 %v1538_v1  ;;  %1271 = vmatpush3.msra.mxu0 %v1538_v1 }
  0x5d   :  { %1310 = vmatprep.subr.mxu1 %v1544_v2  ;;  %1272 = vmatprep.subr.mxu0 %v1544_v2 }
  0x5e   :  { %1311 = vmatpush3.msra.mxu1 %v1544_v2  ;;  %1273 = vmatpush3.msra.mxu0 %v1544_v2 }
  0x5f   :  { %1312 = vmatprep.subr.mxu1 %v1550_v3  ;;  %1274 = vmatprep.subr.mxu0 %v1550_v3 }
  0x60   :  { %1313 = vmatpush3.msra.mxu1 %v1550_v3  ;;  %1275 = vmatpush3.msra.mxu0 %v1550_v3  ;;  %v537_v3 = vld [vmem:[#allocation7 + $0x1d0] sm:$0xff] }
  0x61   :  { %1314 = vmatprep.subr.mxu1 %v1556_v4  ;;  %1276 = vmatprep.subr.mxu0 %v1556_v4 }
  0x62   :  { %1315 = vmatpush3.msra.mxu1 %v1556_v4  ;;  %1277 = vmatpush3.msra.mxu0 %v1556_v4  ;;  %v532_v4 = vld [vmem:[#allocation7 + $0x1a8] sm:$0xff] }
  0x63   :  { %1316 = vmatprep.subr.mxu1 %v1562_v5  ;;  %1278 = vmatprep.subr.mxu0 %v1562_v5 }
  0x64   :  { %1317 = vmatpush3.msra.mxu1 %v1562_v5  ;;  %1279 = vmatpush3.msra.mxu0 %v1562_v5  ;;  %v534_v5 = vld [vmem:[#allocation7 + $0x1b8] sm:$0xff] }
  0x65   :  { %1318 = vmatprep.subr.mxu1 %v1568_v6  ;;  %1280 = vmatprep.subr.mxu0 %v1568_v6 }
  0x66   :  { %1319 = vmatpush3.msra.mxu1 %v1568_v6  ;;  %1281 = vmatpush3.msra.mxu0 %v1568_v6  ;;  %v531_v6 = vld [vmem:[#allocation7 + $0x1a0] sm:$0xff] }
  0x67   :  { %1320 = vmatprep.subr.mxu1 %v1574_v7  ;;  %1282 = vmatprep.subr.mxu0 %v1574_v7 }
  0x68   :  { %1321 = vmatpush3.msra.mxu1 %v1574_v7  ;;  %1283 = vmatpush3.msra.mxu0 %v1574_v7  ;;  %v533_v7 = vld [vmem:[#allocation7 + $0x1b0] sm:$0xff] }
  0x69   :  { %1322 = vmatprep.subr.mxu1 %v1580_v8  ;;  %1284 = vmatprep.subr.mxu0 %v1580_v8 }
  0x6a   :  { %1323 = vmatpush3.msra.mxu1 %v1580_v8  ;;  %1285 = vmatpush3.msra.mxu0 %v1580_v8  ;;  %v528_v8 = vld [vmem:[#allocation7 + $0x188] sm:$0xff] }
  0x6b   :  { %1324 = vmatprep.subr.mxu1 %v1586_v9  ;;  %1286 = vmatprep.subr.mxu0 %v1586_v9 }
  0x6c   :  { %1325 = vmatpush3.msra.mxu1 %v1586_v9  ;;  %1287 = vmatpush3.msra.mxu0 %v1586_v9  ;;  %v530_v9 = vld [vmem:[#allocation7 + $0x198] sm:$0xff] }
  0x6d   :  { %1326 = vmatprep.subr.mxu1 %v1596_v12  ;;  %1288 = vmatprep.subr.mxu0 %v1596_v12 }
  0x6e   :  { %1327 = vmatpush3.msra.mxu1 %v1596_v12  ;;  %1289 = vmatpush3.msra.mxu0 %v1596_v12  ;;  %v524_v12 = vld [vmem:[#allocation7 + $0x168] sm:$0xff] }
  0x6f   :  { %1328 = vmatprep.subr.mxu1 %v1602_v13  ;;  %1290 = vmatprep.subr.mxu0 %v1602_v13 }
  0x70   :  { %1329 = vmatpush3.msra.mxu1 %v1602_v13  ;;  %1291 = vmatpush3.msra.mxu0 %v1602_v13  ;;  %v526_v13 = vld [vmem:[#allocation7 + $0x178] sm:$0xff] }
  0x71   :  { %1330 = vmatprep.subr.mxu1 %v1614_v17  ;;  %1292 = vmatprep.subr.mxu0 %v1614_v17 }
  0x72   :  { %1331 = vmatpush3.msra.mxu1 %v1614_v17  ;;  %1293 = vmatpush3.msra.mxu0 %v1614_v17  ;;  %v522_v17 = vld [vmem:[#allocation7 + $0x158] sm:$0xff] }
  0x73   :  { %1332 = vmatprep.subr.mxu1 %v1622_v19  ;;  %1294 = vmatprep.subr.mxu0 %v1622_v19 }
  0x74   :  { %1333 = vmatpush3.msra.mxu1 %v1622_v19  ;;  %1295 = vmatpush3.msra.mxu0 %v1622_v19  ;;  %v521_v19 = vld [vmem:[#allocation7 + $0x150] sm:$0xff] }
  0x75   :  { %1334 = vmatprep.subr.mxu1 %v1628_v21  ;;  %1296 = vmatprep.subr.mxu0 %v1628_v21 }
  0x76   :  { %1335 = vmatpush3.msra.mxu1 %v1628_v21  ;;  %1297 = vmatpush3.msra.mxu0 %v1628_v21  ;;  %v518_v21 = vld [vmem:[#allocation7 + $0x138] sm:$0xff] }
  0x77   :  { %1336 = vmatprep.subr.mxu1 %v1634_v24  ;;  %1298 = vmatprep.subr.mxu0 %v1634_v24 }
  0x78   :  { %1337 = vmatpush3.msra.mxu1 %v1634_v24  ;;  %1299 = vmatpush3.msra.mxu0 %v1634_v24  ;;  %v512_v24 = vld [vmem:[#allocation7 + $0x108] sm:$0xff] }
  0x79   :  { %565 = vmatprep.subr.mxu0 %v540_v30  ;;  %654 = vmatprep.subr.mxu1 %v542_v31  ;;  %v507_v30 = vld [vmem:[#allocation7 + $0xe0] sm:$0xff]  ;;  %v509_v31 = vld [vmem:[#allocation7 + $0xf0] sm:$0xff] }
 0x116   :  { %v1226_v32 = vpop.f32.mrf.mxu0  ;;  %v1264_v33 = vpop.f32.mrf.mxu1 }
 0x117   :  { %v266_v34 = vadd.f32 %v1264_v33, %v1226_v32  ;;  %v504_v32 = vld [vmem:[#allocation7 + $0xc8] sm:$0xff]  ;;  %v506_v33 = vld [vmem:[#allocation7 + $0xd8] sm:$0xff] }
 0x118   :  { %v175_v35 = vpop.f32.mrf.mxu0  ;;  %v260_v36 = vpop.f32.mrf.mxu1 }
 0x119   :  { %v1713_v37 = vsub.f32 %v1592_v11, %v266_v34  ;;  %v261_v38 = vadd.f32 %v260_v36, %v175_v35  ;;  %v529_v11 = vld [vmem:[#allocation7 + $0x190] sm:$0xff]  ;;  %v503_v34 = vld [vmem:[#allocation7 + $0xc0] sm:$0xff]  ;;  %v500_v36 = vld [vmem:[#allocation7 + $0xa8] sm:$0xff] }
 0x11a   :  { %v1229_v39 = vpop.f32.mrf.mxu0  ;;  %v1267_v40 = vpop.f32.mrf.mxu1  ;;  %v505_v35 = vld [vmem:[#allocation7 + $0xd0] sm:$0xff] }
 0x11b   :  { %v1716_v41 = vsub.f32 %v1590_v10, %v261_v38  ;;  %v276_v42 = vadd.f32 %v1267_v40, %v1229_v39  ;;  %v284_v45 = vmul.f32 %v1713_v37, %v1713_v37  ;;  %v527_v10 = vld [vmem:[#allocation7 + $0x180] sm:$0xff]  ;;  %v502_v38 = vld [vmem:[#allocation7 + $0xb8] sm:$0xff]  ;;  %v501_v40 = vld [vmem:[#allocation7 + $0xb0] sm:$0xff] }
 0x11c   :  { %v185_v43 = vpop.f32.mrf.mxu0  ;;  %v270_v44 = vpop.f32.mrf.mxu1  ;;  %v499_v39 = vld [vmem:[#allocation7 + $0xa0] sm:$0xff] }
 0x11d   :  { %v283_v46 = vmul.f32 %v1716_v41, %v1716_v41  ;;  %v1723_v47 = vsub.f32 %v1608_v16, %v276_v42  ;;  %v271_v48 = vadd.f32 %v270_v44, %v185_v43  ;;  %v520_v16 = vld [vmem:[#allocation7 + $0x148] sm:$0xff]  ;;  %v498_v43 = vld [vmem:[#allocation7 + $0x98] sm:$0xff]  ;;  %v495_v44 = vld [vmem:[#allocation7 + $0x80] sm:$0xff] }
 0x11e   :  { %v496_v42 = vld [vmem:[#allocation7 + $0x88] sm:$0xff] }
 0x11f   :  { %v286_v49 = vmul.f32 %v1723_v47, %v1723_v47  ;;  %v1728_v50 = vsub.f32 %v1606_v15, %v271_v48  ;;  %v287_v51 = vpack.c.bf16 %v284_v45, %v283_v46  ;;  %v525_v15 = vld [vmem:[#allocation7 + $0x170] sm:$0xff]  ;;  %v494_v48 = vld [vmem:[#allocation7 + $0x78] sm:$0xff] }
 0x121   :  { %v285_v52 = vmul.f32 %v1728_v50, %v1728_v50  ;;  %v289_v53 = vunpack.c.l.bf16 %v287_v51  ;;  %v290_v54 = vunpack.c.h.bf16 %v287_v51  ;;  %v493_v51 = vld [vmem:[#allocation7 + $0x70] sm:$0xff] }
 0x123   :  { %v294_v56 = vsub.f32 %v284_v45, %v290_v54  ;;  %1338 = vmatprep.mubr.f32.mxu1 %v289_v53  ;;  %v293_v57 = vsub.f32 %v283_v46, %v289_v53  ;;  %v288_v58 = vpack.c.bf16 %v286_v49, %v285_v52  ;;  %v497_v45 = vld [vmem:[#allocation7 + $0x90] sm:$0xff]  ;;  %v492_v46 = vld [vmem:[#allocation7 + $0x68] sm:$0xff]  ;;  %v490_v53 = vld [vmem:[#allocation7 + $0x58] sm:$0xff] }
 0x124   :  { %1339 = vmatmul.mubr.f32.vlgmr.msra.gmra.mxu1 %v290_v54  ;;  %v487_v54 = vld [vmem:[#allocation7 + $0x40] sm:$0xff] }
 0x125   :  { %1300 = vmatprep.mubr.f32.mxu0 %v293_v57  ;;  %v291_v61 = vunpack.c.l.bf16 %v288_v58  ;;  %v292_v62 = vunpack.c.h.bf16 %v288_v58  ;;  %655 = vmatpush1.msra.mxu1 %v541_v55  ;;  %v489_v55 = vld [vmem:[#allocation7 + $0x50] sm:$0xff]  ;;  %v486_v57 = vld [vmem:[#allocation7 + $0x38] sm:$0xff]  ;;  %v483_v58 = vld [vmem:[#allocation7 + $0x20] sm:$0xff] }
 0x126   :  { %1301 = vmatmul.mubr.f32.vlgmr.msra.gmra.mxu0 %v294_v56  ;;  %656 = vmatprep.subr.mxu1 %v538_v59  ;;  %v484_v56 = vld [vmem:[#allocation7 + $0x28] sm:$0xff]  ;;  %v485_v59 = vld [vmem:[#allocation7 + $0x30] sm:$0xff] }
 0x127   :  { %1341 = vmatprep.mubr.f32.mxu1 %v291_v61  ;;  %v295_v1 = vsub.f32 %v285_v52, %v291_v61  ;;  %v296_v2 = vsub.f32 %v286_v49, %v292_v62  ;;  %566 = vmatpush1.msra.mxu0 %v539_v60  ;;  %v491_v49 = vld [vmem:[#allocation7 + $0x60] sm:$0xff]  ;;  %v488_v52 = vld [vmem:[#allocation7 + $0x48] sm:$0xff]  ;;  %v482_v61 = vld [vmem:[#allocation7 + $0x18] sm:$0xff] }
 0x128   :  { %1342 = vmatmul.mubr.f32.gmra.mxu1 %v292_v62  ;;  %567 = vmatprep.subr.mxu0 %v536_v63  ;;  %v480_v60 = vld [vmem:[#allocation7 + $0x8] sm:$0xff]  ;;  %v479_v62 = vld [vmem:[#allocation7] sm:$0xff]  ;;  %v481_v63 = vld [vmem:[#allocation7 + $0x10] sm:$0xff] }
 0x129   :  { %1303 = vmatprep.mubr.f32.mxu0 %v295_v1  ;;  %568 = vmatpush1.msra.mxu0 %v535_v0  ;;  %v1478_v0 = vmov 0.0   ;;  %v790_v1 = vld [vmem:[#allocation8 + $0xf8] sm:$0xff] }
 0x12a   :  { %1304 = vmatmul.mubr.f32.gmra.mxu0 %v296_v2  ;;  %657 = vmatpush1.msra.mxu1 %v537_v3  ;;  %v822_v2 = vld [vmem:[#allocation8 + $0x1f8] sm:$0xff] }
 0x12b   :  { %569 = vmatprep.subr.mxu0 %v532_v4  ;;  %658 = vmatprep.subr.mxu1 %v534_v5 }
 0x12c   :  { %570 = vmatpush1.msra.mxu0 %v531_v6  ;;  %659 = vmatpush1.msra.mxu1 %v533_v7 }
 0x12d   :  { %571 = vmatprep.subr.mxu0 %v528_v8  ;;  %660 = vmatprep.subr.mxu1 %v530_v9 }
 0x12e   :  { %572 = vmatpush1.msra.mxu0 %v527_v10  ;;  %661 = vmatpush1.msra.mxu1 %v529_v11 }
 0x12f   :  { %573 = vmatprep.subr.mxu0 %v524_v12  ;;  %662 = vmatprep.subr.mxu1 %v526_v13 }
 0x130   :  { %574 = vmatpush1.msra.mxu0 %v523_v14  ;;  %663 = vmatpush1.msra.mxu1 %v525_v15 }
 0x131   :  { %575 = vmatprep.subr.mxu0 %v520_v16  ;;  %664 = vmatprep.subr.mxu1 %v522_v17 }
 0x132   :  { %576 = vmatpush1.msra.mxu0 %v519_v18  ;;  %665 = vmatpush1.msra.mxu1 %v521_v19 }
 0x133   :  { %577 = vmatprep.subr.mxu0 %v516_v20  ;;  %666 = vmatprep.subr.mxu1 %v518_v21 }
 0x134   :  { %578 = vmatpush1.msra.mxu0 %v515_v22  ;;  %667 = vmatpush1.msra.mxu1 %v517_v23  ;;  %v774_v22 = vld [vmem:[#allocation8 + $0x78] sm:$0xff] }
 0x135   :  { %579 = vmatprep.subr.mxu0 %v512_v24  ;;  %668 = vmatprep.subr.mxu1 %v514_v25  ;;  %v806_v23 = vld [vmem:[#allocation8 + $0x178] sm:$0xff]  ;;  %v789_v24 = vld [vmem:[#allocation8 + $0xf0] sm:$0xff] }
 0x136   :  { %580 = vmatpush1.msra.mxu0 %v511_v26  ;;  %669 = vmatpush1.msra.mxu1 %v513_v27  ;;  %v821_v25 = vld [vmem:[#allocation8 + $0x1f0] sm:$0xff] }
 0x137   :  { %581 = vmatprep.subr.mxu0 %v508_v28  ;;  %670 = vmatprep.subr.mxu1 %v510_v29  ;;  %v773_v28 = vld [vmem:[#allocation8 + $0x70] sm:$0xff]  ;;  %v788_v29 = vld [vmem:[#allocation8 + $0xe8] sm:$0xff] }
 0x138   :  { %582 = vmatpush1.msra.mxu0 %v507_v30  ;;  %671 = vmatpush1.msra.mxu1 %v509_v31  ;;  %v820_v30 = vld [vmem:[#allocation8 + $0x1e8] sm:$0xff] }
 0x139   :  { %583 = vmatprep.subr.mxu0 %v504_v32  ;;  %672 = vmatprep.subr.mxu1 %v506_v33  ;;  %v772_v32 = vld [vmem:[#allocation8 + $0x68] sm:$0xff] }
 0x13a   :  { %584 = vmatpush1.msra.mxu0 %v503_v34  ;;  %673 = vmatpush1.msra.mxu1 %v505_v35  ;;  %v804_v33 = vld [vmem:[#allocation8 + $0x168] sm:$0xff]  ;;  %v787_v34 = vld [vmem:[#allocation8 + $0xe0] sm:$0xff] }
 0x13b   :  { %585 = vmatprep.subr.mxu0 %v500_v36  ;;  %674 = vmatprep.subr.mxu1 %v502_v38  ;;  %v819_v35 = vld [vmem:[#allocation8 + $0x1e0] sm:$0xff] }
 0x13c   :  { %586 = vmatpush1.msra.mxu0 %v499_v39  ;;  %675 = vmatpush1.msra.mxu1 %v501_v40  ;;  %v803_v38 = vld [vmem:[#allocation8 + $0x160] sm:$0xff]  ;;  %v786_v39 = vld [vmem:[#allocation8 + $0xd8] sm:$0xff] }
 0x13d   :  { %587 = vmatprep.subr.mxu0 %v496_v42  ;;  %676 = vmatprep.subr.mxu1 %v498_v43  ;;  %v818_v40 = vld [vmem:[#allocation8 + $0x1d8] sm:$0xff] }
 0x13e   :  { %588 = vmatpush1.msra.mxu0 %v495_v44  ;;  %677 = vmatpush1.msra.mxu1 %v497_v45  ;;  %v770_v42 = vld [vmem:[#allocation8 + $0x58] sm:$0xff]  ;;  %v785_v44 = vld [vmem:[#allocation8 + $0xd0] sm:$0xff] }
 0x13f   :  { %589 = vmatprep.subr.mxu0 %v492_v46  ;;  %678 = vmatprep.subr.mxu1 %v494_v48  ;;  %v802_v43 = vld [vmem:[#allocation8 + $0x158] sm:$0xff]  ;;  %v817_v45 = vld [vmem:[#allocation8 + $0x1d0] sm:$0xff]  ;;  %v784_v48 = vld [vmem:[#allocation8 + $0xc8] sm:$0xff] }
 0x140   :  { %590 = vmatpush1.msra.mxu0 %v491_v49  ;;  %679 = vmatpush1.msra.mxu1 %v493_v51  ;;  %v769_v46 = vld [vmem:[#allocation8 + $0x50] sm:$0xff]  ;;  %v816_v49 = vld [vmem:[#allocation8 + $0x1c8] sm:$0xff] }
 0x141   :  { %591 = vmatprep.subr.mxu0 %v488_v52  ;;  %680 = vmatprep.subr.mxu1 %v490_v53  ;;  %v768_v51 = vld [vmem:[#allocation8 + $0x48] sm:$0xff]  ;;  %v783_v53 = vld [vmem:[#allocation8 + $0xc0] sm:$0xff] }
 0x142   :  { %592 = vmatpush1.msra.mxu0 %v487_v54  ;;  %681 = vmatpush1.msra.mxu1 %v489_v55  ;;  %v800_v52 = vld [vmem:[#allocation8 + $0x148] sm:$0xff]  ;;  %v815_v54 = vld [vmem:[#allocation8 + $0x1c0] sm:$0xff] }
 0x143   :  { %593 = vmatprep.subr.mxu0 %v484_v56  ;;  %682 = vmatprep.subr.mxu1 %v486_v57  ;;  %v767_v55 = vld [vmem:[#allocation8 + $0x40] sm:$0xff]  ;;  %v782_v57 = vld [vmem:[#allocation8 + $0xb8] sm:$0xff] }
 0x144   :  { %594 = vmatpush1.msra.mxu0 %v483_v58  ;;  %683 = vmatpush1.msra.mxu1 %v485_v59  ;;  %v799_v56 = vld [vmem:[#allocation8 + $0x140] sm:$0xff]  ;;  %v814_v58 = vld [vmem:[#allocation8 + $0x1b8] sm:$0xff] }
 0x145   :  { %595 = vmatprep.subr.mxu0 %v480_v60  ;;  %684 = vmatprep.subr.mxu1 %v482_v61  ;;  %v766_v59 = vld [vmem:[#allocation8 + $0x38] sm:$0xff]  ;;  %v781_v61 = vld [vmem:[#allocation8 + $0xb0] sm:$0xff] }
 0x146   :  { %596 = vmatpush1.msra.mxu0 %v479_v62  ;;  %629 = vmatprep.mubr.f32.mxu0 %v1478_v0  ;;  %v798_v60 = vld [vmem:[#allocation8 + $0x138] sm:$0xff]  ;;  %v813_v62 = vld [vmem:[#allocation8 + $0x1b0] sm:$0xff] }
 0x147   :  { %685 = vmatpush1.msra.mxu1 %v481_v63  ;;  %718 = vmatprep.mubr.f32.mxu1 %v1478_v0  ;;  %v765_v63 = vld [vmem:[#allocation8 + $0x30] sm:$0xff] }
 0x148   :  { %1104 = vmatprep.subr.mxu0 %v790_v1  ;;  %1148 = vmatprep.subr.mxu1 %v822_v2  ;;  %v780_v1 = vld [vmem:[#allocation8 + $0xa8] sm:$0xff] }
 0x149   :  { %v812_v2 = vld [vmem:[#allocation8 + $0x1a8] sm:$0xff] }
 0x1e4   :  { %v1340_v3 = vpop.f32.mrf.mxu1 }
 0x1e6   :  { %v1302_v4 = vpop.f32.mrf.mxu0  ;;  %v448_v5 = vpop.f32.mrf.mxu1 }
 0x1e7   :  { %v454_v6 = vadd.f32 %v1340_v3, %v1302_v4  ;;  %v764_v3 = vld [vmem:[#allocation8 + $0x28] sm:$0xff] }
 0x1e8   :  { %v363_v7 = vpop.f32.mrf.mxu0  ;;  %v1343_v8 = vpop.f32.mrf.mxu1  ;;  %v796_v4 = vld [vmem:[#allocation8 + $0x128] sm:$0xff] }
 0x1e9   :  { %v449_v9 = vadd.f32 %v448_v5, %v363_v7  ;;  %v468_v11 = vadd.f32 1e-05, %v454_v6  ;;  %v779_v5 = vld [vmem:[#allocation8 + $0xa0] sm:$0xff] }
 0x1ea   :  { %v1305_v10 = vpop.f32.mrf.mxu0  ;;  %v458_v13 = vpop.f32.mrf.mxu1  ;;  %v811_v6 = vld [vmem:[#allocation8 + $0x1a0] sm:$0xff] }
 0x1eb   :  { %v467_v12 = vadd.f32 1e-05, %v449_v9  ;;  %v464_v16 = vadd.f32 %v1343_v8, %v1305_v10  ;;  %v763_v7 = vld [vmem:[#allocation8 + $0x20] sm:$0xff]  ;;  %v778_v9 = vld [vmem:[#allocation8 + $0x98] sm:$0xff] }
 0x1ec   :  { %v373_v14 = vpop.f32.mrf.mxu0  ;;  %v795_v8 = vld [vmem:[#allocation8 + $0x120] sm:$0xff]  ;;  %v810_v10 = vld [vmem:[#allocation8 + $0x198] sm:$0xff] }
 0x1ed   :  { %1354 = vrsqrt.f32 %v467_v12  ;;  %v459_v15 = vadd.f32 %v458_v13, %v373_v14  ;;  %v470_v18 = vadd.f32 1e-05, %v464_v16  ;;  %v794_v12 = vld [vmem:[#allocation8 + $0x118] sm:$0xff]  ;;  %v777_v13 = vld [vmem:[#allocation8 + $0x90] sm:$0xff] }
 0x1ee   :  { %1356 = vrsqrt.f32 %v468_v11  ;;  %v762_v11 = vld [vmem:[#allocation8 + $0x18] sm:$0xff]  ;;  %v809_v14 = vld [vmem:[#allocation8 + $0x190] sm:$0xff] }
 0x1ef   :  { %v469_v17 = vadd.f32 1e-05, %v459_v15  ;;  %v761_v15 = vld [vmem:[#allocation8 + $0x10] sm:$0xff] }
 0x1f0   :  { %v793_v16 = vld [vmem:[#allocation8 + $0x110] sm:$0xff] }
 0x1f1   :  { %1358 = vrsqrt.f32 %v469_v17  ;;  %v776_v17 = vld [vmem:[#allocation8 + $0x88] sm:$0xff] }
 0x1f2   :  { %1360 = vrsqrt.f32 %v470_v18  ;;  %v808_v18 = vld [vmem:[#allocation8 + $0x188] sm:$0xff] }
 0x1fa   :  { %v1355_v19 = vpop.eup %1354 }
 0x1fb   :  { %v475_v20 = vmul.f32 %v1355_v19, %v1716_v41  ;;  %v1357_v21 = vpop.eup %1356  ;;  %v805_v41 = vld [vmem:[#allocation8 + $0x170] sm:$0xff]  ;;  %v760_v19 = vld [vmem:[#allocation8 + $0x8] sm:$0xff] }
 0x1fc   :  { %v476_v26 = vmul.f32 %v1357_v21, %v1713_v37  ;;  %v775_v21 = vld [vmem:[#allocation8 + $0x80] sm:$0xff] }
 0x1fd   :  { %630 = vmatmul.mubr.f32.vlgmr.msra.gmra.mxu0 %v475_v20  ;;  %719 = vmatmul.mubr.f32.vlgmr.msra.gmra.mxu1 %v475_v20  ;;  %v792_v20 = vld [vmem:[#allocation8 + $0x108] sm:$0xff] }
 0x1fe   :  { %635 = vmatprep.mubr.f32.mxu0 %v1478_v0  ;;  %724 = vmatprep.mubr.f32.mxu1 %v1478_v0  ;;  %v1359_v27 = vpop.eup %1358 }
 0x1ff   :  { %1105 = vmatpush3.msra.mxu0 %v774_v22  ;;  %1149 = vmatpush3.msra.mxu1 %v806_v23  ;;  %v477_v31 = vmul.f32 %v1359_v27, %v1728_v50  ;;  %v1361_v37 = vpop.eup %1360  ;;  %v771_v50 = vld [vmem:[#allocation8 + $0x60] sm:$0xff] }
 0x200   :  { %1106 = vmatprep.subr.mxu0 %v789_v24  ;;  %1150 = vmatprep.subr.mxu1 %v821_v25  ;;  %v478_v36 = vmul.f32 %v1361_v37, %v1723_v47  ;;  %v801_v47 = vld [vmem:[#allocation8 + $0x150] sm:$0xff]  ;;  %v807_v22 = vld [vmem:[#allocation8 + $0x180] sm:$0xff]  ;;  %v545_v25 = vlaneseq }
 0x201   :  { %636 = vmatmul.mubr.f32.gmra.mxu0 %v476_v26  ;;  %725 = vmatmul.mubr.f32.gmra.mxu1 %v476_v26  ;;  %v759_v23 = vld [vmem:[#allocation8] sm:$0xff] }
 0x202   :  { %641 = vmatprep.mubr.f32.mxu0 %v1478_v0  ;;  %730 = vmatprep.mubr.f32.mxu1 %v1478_v0  ;;  %v791_v24 = vld [vmem:[#allocation8 + $0x100] sm:$0xff]  ;;  %v546_v26 = vshrl.u32 %v545_v25, 7 }
 0x203   :  { %1107 = vmatpush3.msra.mxu0 %v773_v28  ;;  %1151 = vmatpush3.msra.mxu1 %v805_v41  ;;  %v543_v41 = vld [vmem:[%s1759_s3] sm:$0xf] }
 0x204   :  { %1108 = vmatprep.subr.mxu0 %v788_v29  ;;  %1152 = vmatprep.subr.mxu1 %v820_v30  ;;  %v547_v27 = vsub.s32 0, %v546_v26  ;;  %v555_v28 = vsub.s32 2, %v546_v26  ;;  %v551_v29 = vsub.s32 1, %v546_v26  ;;  %v559_v30 = vsub.s32 3, %v546_v26 }
 0x205   :  { %642 = vmatmul.mubr.f32.gmra.mxu0 %v477_v31  ;;  %731 = vmatmul.mubr.f32.gmra.mxu1 %v477_v31 }
 0x206   :  { %647 = vmatprep.mubr.f32.mxu0 %v1478_v0  ;;  %736 = vmatprep.mubr.f32.mxu1 %v1478_v0  ;;  %v797_v0 = vld [vmem:[#allocation8 + $0x130] sm:$0xff]  ;;  %v548_v31 = vrot.slane %v543_v41, %v547_v27  ;;  %v556_v37 = vrot.slane %v543_v41, %v555_v28 }
 0x207   :  { %1109 = vmatpush3.msra.mxu0 %v772_v32  ;;  %1153 = vmatpush3.msra.mxu1 %v804_v33  ;;  %v552_v32 = vrot.slane %v543_v41, %v551_v29  ;;  %v560_v33 = vrot.slane %v543_v41, %v559_v30 }
 0x208   :  { %1110 = vmatprep.subr.mxu0 %v787_v34  ;;  %1154 = vmatprep.subr.mxu1 %v819_v35 }
 0x209   :  { %648 = vmatmul.mubr.f32.gmra.mxu0 %v478_v36  ;;  %737 = vmatmul.mubr.f32.gmra.mxu1 %v478_v36 }
 0x20a   :  { %1111 = vmatpush3.msra.mxu0 %v771_v50  ;;  %1155 = vmatpush3.msra.mxu1 %v803_v38 }
 0x20b   :  { %1112 = vmatprep.subr.mxu0 %v786_v39  ;;  %1156 = vmatprep.subr.mxu1 %v818_v40 }
 0x20c   :  { %1113 = vmatpush3.msra.mxu0 %v770_v42  ;;  %1157 = vmatpush3.msra.mxu1 %v802_v43 }
 0x20d   :  { %1114 = vmatprep.subr.mxu0 %v785_v44  ;;  %1158 = vmatprep.subr.mxu1 %v817_v45 }
 0x20e   :  { %1115 = vmatpush3.msra.mxu0 %v769_v46  ;;  %1159 = vmatpush3.msra.mxu1 %v801_v47 }
 0x20f   :  { %1116 = vmatprep.subr.mxu0 %v784_v48  ;;  %1160 = vmatprep.subr.mxu1 %v816_v49 }
 0x210   :  { %1117 = vmatpush3.msra.mxu0 %v768_v51  ;;  %1161 = vmatpush3.msra.mxu1 %v800_v52 }
 0x211   :  { %1118 = vmatprep.subr.mxu0 %v783_v53  ;;  %1162 = vmatprep.subr.mxu1 %v815_v54 }
 0x212   :  { %1119 = vmatpush3.msra.mxu0 %v767_v55  ;;  %1163 = vmatpush3.msra.mxu1 %v799_v56 }
 0x213   :  { %1120 = vmatprep.subr.mxu0 %v782_v57  ;;  %1164 = vmatprep.subr.mxu1 %v814_v58 }
 0x214   :  { %1121 = vmatpush3.msra.mxu0 %v766_v59  ;;  %1165 = vmatpush3.msra.mxu1 %v798_v60 }
 0x215   :  { %1122 = vmatprep.subr.mxu0 %v781_v61  ;;  %1166 = vmatprep.subr.mxu1 %v813_v62 }
 0x216   :  { %1123 = vmatpush3.msra.mxu0 %v765_v63  ;;  %1167 = vmatpush3.msra.mxu1 %v797_v0 }
 0x217   :  { %1124 = vmatprep.subr.mxu0 %v780_v1  ;;  %1168 = vmatprep.subr.mxu1 %v812_v2 }
 0x218   :  { %1125 = vmatpush3.msra.mxu0 %v764_v3  ;;  %1169 = vmatpush3.msra.mxu1 %v796_v4 }
 0x219   :  { %1126 = vmatprep.subr.mxu0 %v779_v5  ;;  %1170 = vmatprep.subr.mxu1 %v811_v6 }
 0x21a   :  { %1127 = vmatpush3.msra.mxu0 %v763_v7  ;;  %1171 = vmatpush3.msra.mxu1 %v795_v8 }
 0x21b   :  { %1128 = vmatprep.subr.mxu0 %v778_v9  ;;  %1172 = vmatprep.subr.mxu1 %v810_v10 }
 0x21c   :  { %1129 = vmatpush3.msra.mxu0 %v762_v11  ;;  %1173 = vmatpush3.msra.mxu1 %v794_v12 }
 0x21d   :  { %1130 = vmatprep.subr.mxu0 %v777_v13  ;;  %1174 = vmatprep.subr.mxu1 %v809_v14 }
 0x21e   :  { %1131 = vmatpush3.msra.mxu0 %v761_v15  ;;  %1175 = vmatpush3.msra.mxu1 %v793_v16 }
 0x21f   :  { %1132 = vmatprep.subr.mxu0 %v776_v17  ;;  %1176 = vmatprep.subr.mxu1 %v808_v18 }
 0x220   :  { %1133 = vmatpush3.msra.mxu0 %v760_v19  ;;  %1177 = vmatpush3.msra.mxu1 %v792_v20 }
 0x221   :  { %1134 = vmatprep.subr.mxu0 %v775_v21  ;;  %1178 = vmatprep.subr.mxu1 %v807_v22  ;;  %v1023_v22 = vld [vmem:[%s1761_s5] ss:$0 sm:$0xff]  ;;  %s1479_s5 = smov [#allocation10]  }
 0x222   :  { %1135 = vmatpush3.msra.mxu0 %v759_v23  ;;  %1179 = vmatpush3.msra.mxu1 %v791_v24  ;;  %s1009_s20 = sshll.u32 %s1479_s5, 4  ;;  %s1010_s20 = int_to_ptr.vmem [resolvable:$true] %s1009_s20 }
 0x223   :  { %s1442_s21 = scalar_lea.vmem %s1010_s20, 512  ;;  %p1447_p7 = scmp.lt.s32.totalorder %s1010_s20, %s1010_s20 }
 0x224   :  { %p1443_p6 = scmp.ne.s32.totalorder %s1010_s20, %s1442_s21  ;;  %p1448_p8 = scmp.lt.s32.totalorder %s1442_s21, %s1442_s21 }
 0x226   :  { %p1449_p9 = por %p1448_p8, %p1447_p7 }
 0x228   :  { %p1450_p10 = pnand %p1449_p9, %p1443_p6 }
 0x2bd   :  { %v631_v34 = vpop.f32.mrf.mxu0  ;;  %v720_v35 = vpop.f32.mrf.mxu1 }
 0x2be   :  { %v632_v36 = vadd.f32 %v631_v34, %v548_v31  ;;  %v721_v50 = vadd.f32 %v720_v35, %v556_v37 }
 0x2bf   :  { %v633_v38 = vpop.f32.mrf.mxu0  ;;  %v722_v39 = vpop.f32.mrf.mxu1 }
 0x2c0   :  { %v634_v40 = vadd.f32 %v633_v38, %v552_v32  ;;  %v723_v42 = vadd.f32 %v722_v39, %v560_v33  ;;  %v743_v47 = vmax.f32 %v632_v36, 0.0  ;;  %v745_v48 = vmax.f32 %v721_v50, 0.0 }
 0x2c1   :  { %v637_v43 = vpop.f32.mrf.mxu0  ;;  %v726_v44 = vpop.f32.mrf.mxu1 }
 0x2c2   :  { %v744_v45 = vmax.f32 %v634_v40, 0.0  ;;  %v746_v46 = vmax.f32 %v723_v42, 0.0  ;;  %v638_v49 = vadd.f32 %v637_v43, %v548_v31  ;;  %v727_v51 = vadd.f32 %v726_v44, %v556_v37 }
 0x2c3   :  { %v639_v52 = vpop.f32.mrf.mxu0  ;;  %v728_v53 = vpop.f32.mrf.mxu1 }
 0x2c4   :  { %v640_v54 = vadd.f32 %v639_v52, %v552_v32  ;;  %v729_v55 = vadd.f32 %v728_v53, %v560_v33  ;;  %894 = vmatprep.mubr.f32.mxu0 %v744_v45  ;;  %979 = vmatprep.mubr.f32.mxu1 %v746_v46  ;;  %v747_v60 = vmax.f32 %v638_v49, 0.0  ;;  %v749_v61 = vmax.f32 %v727_v51, 0.0 }
 0x2c5   :  { %v643_v56 = vpop.f32.mrf.mxu0  ;;  %v732_v57 = vpop.f32.mrf.mxu1  ;;  %895 = vmatmul.mubr.f32.vlgmr.msra.gmra.mxu0 %v743_v47  ;;  %980 = vmatmul.mubr.f32.vlgmr.msra.gmra.mxu1 %v745_v48 }
 0x2c6   :  { %v748_v58 = vmax.f32 %v640_v54, 0.0  ;;  %v750_v59 = vmax.f32 %v729_v55, 0.0  ;;  %v644_v62 = vadd.f32 %v643_v56, %v548_v31  ;;  %v733_v63 = vadd.f32 %v732_v57, %v556_v37 }
 0x2c7   :  { %v645_v0 = vpop.f32.mrf.mxu0  ;;  %v734_v1 = vpop.f32.mrf.mxu1 }
 0x2c8   :  { %v646_v2 = vadd.f32 %v645_v0, %v552_v32  ;;  %v735_v3 = vadd.f32 %v734_v1, %v560_v33  ;;  %899 = vmatprep.mubr.f32.mxu0 %v748_v58  ;;  %984 = vmatprep.mubr.f32.mxu1 %v750_v59  ;;  %v751_v8 = vmax.f32 %v644_v62, 0.0  ;;  %v753_v9 = vmax.f32 %v733_v63, 0.0 }
 0x2c9   :  { %v649_v4 = vpop.f32.mrf.mxu0  ;;  %v738_v5 = vpop.f32.mrf.mxu1  ;;  %900 = vmatmul.mubr.f32.gmra.mxu0 %v747_v60  ;;  %985 = vmatmul.mubr.f32.gmra.mxu1 %v749_v61 }
 0x2ca   :  { %v752_v6 = vmax.f32 %v646_v2, 0.0  ;;  %v754_v7 = vmax.f32 %v735_v3, 0.0  ;;  %v650_v10 = vadd.f32 %v649_v4, %v548_v31  ;;  %v739_v11 = vadd.f32 %v738_v5, %v556_v37 }
 0x2cb   :  { %v651_v12 = vpop.f32.mrf.mxu0  ;;  %v740_v13 = vpop.f32.mrf.mxu1 }
 0x2cc   :  { %v652_v14 = vadd.f32 %v651_v12, %v552_v32  ;;  %v741_v15 = vadd.f32 %v740_v13, %v560_v33  ;;  %904 = vmatprep.mubr.f32.mxu0 %v752_v6  ;;  %989 = vmatprep.mubr.f32.mxu1 %v754_v7  ;;  %v755_v18 = vmax.f32 %v650_v10, 0.0  ;;  %v757_v19 = vmax.f32 %v739_v11, 0.0 }
 0x2cd   :  { %905 = vmatmul.mubr.f32.gmra.mxu0 %v751_v8  ;;  %990 = vmatmul.mubr.f32.gmra.mxu1 %v753_v9 }
 0x2ce   :  { %v756_v16 = vmax.f32 %v652_v14, 0.0  ;;  %v758_v17 = vmax.f32 %v741_v15, 0.0 }
 0x2d0   :  { %909 = vmatprep.mubr.f32.mxu0 %v756_v16  ;;  %994 = vmatprep.mubr.f32.mxu1 %v758_v17 }
 0x2d1   :  { %910 = vmatmul.mubr.f32.gmra.mxu0 %v755_v18  ;;  %995 = vmatmul.mubr.f32.gmra.mxu1 %v757_v19 }
 0x385   :  { %v1136_v20 = vpop.f32.mrf.mxu0  ;;  %v1180_v21 = vpop.f32.mrf.mxu1 }
 0x387   :  { %v1137_v23 = vpop.f32.mrf.mxu0  ;;  %v1181_v24 = vpop.f32.mrf.mxu1 }
 0x388   :  { %v1138_v25 = vadd.f32 %v1137_v23, %v1136_v20  ;;  %v1182_v41 = vadd.f32 %v1181_v24, %v1180_v21 }
 0x389   :  { %v1139_v26 = vpop.f32.mrf.mxu0  ;;  %v1183_v27 = vpop.f32.mrf.mxu1 }
 0x38a   :  { %v897_v28 = vadd.f32 %v1138_v25, %v1023_v22 }
 0x38b   :  { %v1140_v29 = vpop.f32.mrf.mxu0  ;;  %v1184_v30 = vpop.f32.mrf.mxu1 }
 0x38c   :  { %v982_v31 = vadd.f32 %v1182_v41, %v897_v28  ;;  %v1141_v37 = vadd.f32 %v1140_v29, %v1139_v26  ;;  %v1185_v35 = vadd.f32 %v1184_v30, %v1183_v27 }
 0x38d   :  { %v1142_v32 = vpop.f32.mrf.mxu0  ;;  %v1186_v33 = vpop.f32.mrf.mxu1 }
 0x38e   :  { %1000 = vst [vmem:[#allocation10] sm:$0xff] %v982_v31  ;;  %v902_v34 = vadd.f32 %v1141_v37, %v1023_v22 }
 0x38f   :  { %v1143_v36 = vpop.f32.mrf.mxu0  ;;  %v1187_v50 = vpop.f32.mrf.mxu1 }
 0x390   :  { %v987_v38 = vadd.f32 %v1185_v35, %v902_v34  ;;  %v1144_v39 = vadd.f32 %v1143_v36, %v1142_v32  ;;  %v1188_v44 = vadd.f32 %v1187_v50, %v1186_v33 }
 0x391   :  { %v1145_v40 = vpop.f32.mrf.mxu0  ;;  %v1189_v42 = vpop.f32.mrf.mxu1 }
 0x392   :  { %1001 = vst [vmem:[#allocation10 + $0x8] sm:$0xff] %v987_v38  ;;  %v907_v43 = vadd.f32 %v1144_v39, %v1023_v22 }
 0x393   :  { %v1146_v45 = vpop.f32.mrf.mxu0  ;;  %v1190_v46 = vpop.f32.mrf.mxu1 }
 0x394   :  { %v992_v47 = vadd.f32 %v1188_v44, %v907_v43  ;;  %v1147_v48 = vadd.f32 %v1146_v45, %v1145_v40  ;;  %v1191_v51 = vadd.f32 %v1190_v46, %v1189_v42 }
 0x396   :  { %1002 = vst [vmem:[#allocation10 + $0x10] sm:$0xff] %v992_v47  ;;  %v912_v49 = vadd.f32 %v1147_v48, %v1023_v22 }
 0x398   :  { %v997_v52 = vadd.f32 %v1191_v51, %v912_v49 }
 0x39a   :  { %1003 = vst [vmem:[#allocation10 + $0x18] sm:$0xff] %v997_v52 }
 0x39b   :  { %1453 = shalt.err (!%p1450_p10)
}
 0x39c   :  { %1015 = dma.vmem_to_hbm [thread:$0]  %s1010_s20, 512, %s1762_s6, [#allocation4], %s1472_s26, %s1472_s26, %s1473_s27  }
 0x39d   :  { %1468 = dma.done.wait [#allocation4], 512  }
 0x39e   :  { %1469 = vsyncadd [#allocation4], 4294966784 }
 0x39f   :  { %1019 = vsyncpa [#allocation3], 1 }
 0x3a0   :  { %1020 = vsyncpa [#allocation6], 1 }
 0x3a1   :  { %1021 = vsyncpa [#allocation9], 1 }
 0x3a2   :  { %1022 = vsyncpa [#allocation4], 1 }

</bundles_post_ra>
